<compile_context>
chip_gen: v7x
topology: tpu7x:2x2x1
jax: 0.10.0
libtpu: 0.0.40
codegen_flags: <defaults>
</compile_context>

<pallas_src>
import jax
import jax.numpy as jnp
import numpy as np
from jax.experimental import pallas as pl
from jax.experimental.pallas import tpu as pltpu


def _round_up(x, m):
    return ((x + m - 1) // m) * m


def parser_mlp_kernel(x_ref, w1_ref, b1_ref, w2_ref, b2_ref, out_ref):
    # x_ref  : (TILE_B, K_pad)   bf16
    # w1_ref : (K_pad, H_pad)    bf16   (resident across the batch grid)
    # b1_ref : (1, H_pad)        f32
    # w2_ref : (H_pad, C_pad)    bf16   (resident across the batch grid)
    # b2_ref : (1, C_pad)        f32
    # out_ref: (TILE_B, C_pad)   f32
    h = jnp.dot(x_ref[...], w1_ref[...], preferred_element_type=jnp.float32)
    h = jnp.maximum(h + b1_ref[...], 0.0)  # relu_ (f32 on the VPU)
    logits = jnp.dot(h.astype(w2_ref.dtype), w2_ref[...],
                     preferred_element_type=jnp.float32)
    out_ref[...] = logits + b2_ref[...]


def parser_model_forward(w_idx, embeddings, W1, b1, W2, b2, *, tile_b=128):
    """w_idx: (B, n_features) int32 token indices. Returns (B, n_classes) f32 logits."""
    B, n_features = w_idx.shape
    embed_size = embeddings.shape[1]
    K = n_features * embed_size
    hidden = W1.shape[1]
    n_classes = W2.shape[1]

    K_pad = _round_up(K, 128)
    H_pad = _round_up(hidden, 128)
    C_pad = _round_up(n_classes, 128)
    B_pad = _round_up(B, tile_b)

    # Embedding lookup (row gather) + flatten.
    # TODO(synk): a data-dependent row gather has no clean single-op Pallas/Mosaic
    # equivalent at these shapes; it stays as fused XLA glue feeding the kernel.
    x = jnp.take(embeddings, w_idx.reshape(-1), axis=0).reshape(B, K)

    # Zero-pad everything to lane-dense shapes (math is unchanged) and cast the
    # matmul operands to bf16 (MXU-native); accumulation stays f32.
    x_p = jnp.zeros((B_pad, K_pad), jnp.bfloat16).at[:B, :K].set(x.astype(jnp.bfloat16))
    w1_p = jnp.zeros((K_pad, H_pad), jnp.bfloat16).at[:K, :hidden].set(W1.astype(jnp.bfloat16))
    b1_p = jnp.zeros((1, H_pad), jnp.float32).at[0, :hidden].set(b1.astype(jnp.float32))
    w2_p = jnp.zeros((H_pad, C_pad), jnp.bfloat16).at[:hidden, :n_classes].set(W2.astype(jnp.bfloat16))
    b2_p = jnp.zeros((1, C_pad), jnp.float32).at[0, :n_classes].set(b2.astype(jnp.float32))

    grid = (B_pad // tile_b,)
    out_pad = pl.pallas_call(
        parser_mlp_kernel,
        out_shape=jax.ShapeDtypeStruct((B_pad, C_pad), jnp.float32),
        grid=grid,
        in_specs=[
            pl.BlockSpec((tile_b, K_pad), lambda i: (i, 0)),  # x: batch-tiled
            pl.BlockSpec((K_pad, H_pad), lambda i: (0, 0)),   # W1: resident
            pl.BlockSpec((1, H_pad), lambda i: (0, 0)),       # b1: resident
            pl.BlockSpec((H_pad, C_pad), lambda i: (0, 0)),   # W2: resident
            pl.BlockSpec((1, C_pad), lambda i: (0, 0)),       # b2: resident
        ],
        out_specs=pl.BlockSpec((tile_b, C_pad), lambda i: (i, 0)),
        compiler_params=pltpu.CompilerParams(
            dimension_semantics=("parallel",),     # batch axis -> both TCs on v7x
            vmem_limit_bytes=32 * 1024 * 1024,     # fits easily on v5e/v6e/v7x
        ),
    )(x_p, w1_p, b1_p, w2_p, b2_p)

    return out_pad[:B, :n_classes]


def make_params(key, num_words, embed_size, n_features, hidden_size, n_classes):
    k_emb, k_w1, k_b1, k_w2, k_b2 = jax.random.split(key, 5)

    embeddings = jax.random.normal(k_emb, (num_words, embed_size), dtype=jnp.float32) * 0.1

    # nn.init.xavier_uniform_: U(-a, a), a = sqrt(6 / (fan_in + fan_out))
    fan_in1 = n_features * embed_size
    a1 = float(np.sqrt(6.0 / (fan_in1 + hidden_size)))
    W1 = jax.random.uniform(k_w1, (fan_in1, hidden_size), jnp.float32, -a1, a1)
    # nn.init.uniform_: U(0, 1)
    b1 = jax.random.uniform(k_b1, (hidden_size,), jnp.float32, 0.0, 1.0)

    a2 = float(np.sqrt(6.0 / (hidden_size + n_classes)))
    W2 = jax.random.uniform(k_w2, (hidden_size, n_classes), jnp.float32, -a2, a2)
    b2 = jax.random.uniform(k_b2, (n_classes,), jnp.float32, 0.0, 1.0)

    return embeddings, W1, b1, W2, b2


if __name__ == "__main__":
    # Small but grid-exercising shapes; hidden_size matches the module default.
    batch = 256
    num_words = 50
    embed_size = 8
    n_features = 36
    hidden_size = 200
    n_classes = 3

    key = jax.random.PRNGKey(0)
    k_params, k_idx = jax.random.split(key)

    embeddings, W1, b1, W2, b2 = make_params(
        k_params, num_words, embed_size, n_features, hidden_size, n_classes
    )
    w_idx = jax.random.randint(k_idx, (batch, n_features), 0, num_words, dtype=jnp.int32)

    fwd = jax.jit(parser_model_forward)
    logits = fwd(w_idx, embeddings, W1, b1, W2, b2)
    logits = jax.block_until_ready(logits)

    # Reference check (plain JAX, f32) — bf16 MXU inputs need a looser tolerance.
    x_ref = jnp.take(embeddings, w_idx.reshape(-1), axis=0).reshape(batch, -1)
    h_ref = jnp.maximum(x_ref @ W1 + b1, 0.0)
    logits_ref = h_ref @ W2 + b2
    np.testing.assert_allclose(np.asarray(logits), np.asarray(logits_ref), rtol=3e-2, atol=3e-2)

    assert logits.shape == (batch, n_classes)
    print("KERNEL_OK")
</pallas_src>

<mosaic_0001>
module attributes {stable_mosaic.version = 11 : i64} {
  func.func @parser_mlp_kernel(%arg0: i32, %arg1: memref<128x384xbf16, #tpu.memory_space<vmem>>, %arg2: memref<384x256xbf16, #tpu.memory_space<vmem>>, %arg3: memref<1x256xf32, #tpu.memory_space<vmem>>, %arg4: memref<256x128xbf16, #tpu.memory_space<vmem>>, %arg5: memref<1x128xf32, #tpu.memory_space<vmem>>, %arg6: memref<128x128xf32, #tpu.memory_space<vmem>>) attributes {dimension_semantics = [#tpu.dimension_semantics<parallel>], iteration_bounds = array<i64: 2>, scalar_prefetch = 0 : i64, scratch_operands = 0 : i64, tpu.core_type = #tpu.core_type<tc>, window_params = [{transform_indices = @transform_0, window_bounds = array<i64: 128, 384>}, {pipeline_mode = #tpu.pipeline_mode<synchronous>, transform_indices = @transform_1, window_bounds = array<i64: 384, 256>}, {pipeline_mode = #tpu.pipeline_mode<synchronous>, transform_indices = @transform_2, window_bounds = array<i64: 1, 256>}, {pipeline_mode = #tpu.pipeline_mode<synchronous>, transform_indices = @transform_3, window_bounds = array<i64: 256, 128>}, {pipeline_mode = #tpu.pipeline_mode<synchronous>, transform_indices = @transform_4, window_bounds = array<i64: 1, 128>}, {transform_indices = @transform_5, window_bounds = array<i64: 128, 128>}]} {
    %c0 = arith.constant 0 : index
    %c0_0 = arith.constant 0 : index
    %0 = vector.load %arg1[%c0, %c0_0] : memref<128x384xbf16, #tpu.memory_space<vmem>>, vector<128x384xbf16>
    %c0_1 = arith.constant 0 : index
    %c0_2 = arith.constant 0 : index
    %1 = vector.load %arg2[%c0_1, %c0_2] : memref<384x256xbf16, #tpu.memory_space<vmem>>, vector<384x256xbf16>
    %cst = arith.constant dense<0.000000e+00> : vector<128x256xf32>
    %2 = tpu.matmul %0, %1, %cst {dimension_numbers = #tpu.dot_dimension_numbers<[1], [0], [0], [1], [0, 0, 1, 1], [], []>} : vector<128x384xbf16>, vector<384x256xbf16>, vector<128x256xf32> -> vector<128x256xf32>
    %c0_3 = arith.constant 0 : index
    %c0_4 = arith.constant 0 : index
    %3 = vector.load %arg3[%c0_3, %c0_4] : memref<1x256xf32, #tpu.memory_space<vmem>>, vector<1x256xf32>
    %4 = vector.broadcast %3 : vector<1x256xf32> to vector<128x256xf32>
    %5 = arith.addf %2, %4 : vector<128x256xf32>
    %cst_5 = arith.constant 0.000000e+00 : f32
    %6 = vector.broadcast %cst_5 : f32 to vector<128x256xf32>
    %7 = arith.maximumf %5, %6 : vector<128x256xf32>
    %8 = arith.truncf %7 : vector<128x256xf32> to vector<128x256xbf16>
    %c0_6 = arith.constant 0 : index
    %c0_7 = arith.constant 0 : index
    %9 = vector.load %arg4[%c0_6, %c0_7] : memref<256x128xbf16, #tpu.memory_space<vmem>>, vector<256x128xbf16>
    %cst_8 = arith.constant dense<0.000000e+00> : vector<128x128xf32>
    %10 = tpu.matmul %8, %9, %cst_8 {dimension_numbers = #tpu.dot_dimension_numbers<[1], [0], [0], [1], [0, 0, 1, 1], [], []>} : vector<128x256xbf16>, vector<256x128xbf16>, vector<128x128xf32> -> vector<128x128xf32>
    %c0_9 = arith.constant 0 : index
    %c0_10 = arith.constant 0 : index
    %11 = vector.load %arg5[%c0_9, %c0_10] : memref<1x128xf32, #tpu.memory_space<vmem>>, vector<1x128xf32>
    %12 = vector.broadcast %11 : vector<1x128xf32> to vector<128x128xf32>
    %13 = arith.addf %10, %12 : vector<128x128xf32>
    %c0_11 = arith.constant 0 : index
    %c0_12 = arith.constant 0 : index
    %14 = vector.load %arg6[%c0_11, %c0_12] : memref<128x128xf32, #tpu.memory_space<vmem>>, vector<128x128xf32>
    tpu.vector_store %arg6[%c0_11, %c0_12], %13 {strides = array<i32>} : memref<128x128xf32, #tpu.memory_space<vmem>>, vector<128x128xf32>,
    return
  }
  func.func @transform_0(%arg0: i32) -> (i32, i32) {
    %c0_i32 = arith.constant 0 : i32
    %c0_i32_0 = arith.constant 0 : i32
    return %arg0, %c0_i32 : i32, i32
  }
  func.func @transform_1(%arg0: i32) -> (i32, i32) {
    %c0_i32 = arith.constant 0 : i32
    %c0_i32_0 = arith.constant 0 : i32
    %c0_i32_1 = arith.constant 0 : i32
    return %c0_i32, %c0_i32_0 : i32, i32
  }
  func.func @transform_2(%arg0: i32) -> (i32, i32) {
    %c0_i32 = arith.constant 0 : i32
    %c0_i32_0 = arith.constant 0 : i32
    %c0_i32_1 = arith.constant 0 : i32
    return %c0_i32, %c0_i32_0 : i32, i32
  }
  func.func @transform_3(%arg0: i32) -> (i32, i32) {
    %c0_i32 = arith.constant 0 : i32
    %c0_i32_0 = arith.constant 0 : i32
    %c0_i32_1 = arith.constant 0 : i32
    return %c0_i32, %c0_i32_0 : i32, i32
  }
  func.func @transform_4(%arg0: i32) -> (i32, i32) {
    %c0_i32 = arith.constant 0 : i32
    %c0_i32_0 = arith.constant 0 : i32
    %c0_i32_1 = arith.constant 0 : i32
    return %c0_i32, %c0_i32_0 : i32, i32
  }
  func.func @transform_5(%arg0: i32) -> (i32, i32) {
    %c0_i32 = arith.constant 0 : i32
    %c0_i32_0 = arith.constant 0 : i32
    return %arg0, %c0_i32 : i32, i32
  }
}

</mosaic_0001>

<bundles_post_ra>
// kernel: parser_model_forward.1
= control target key start
LH: loop header
LB: loop body
LE: loop exit
PB: predicated region body
PF: predicated region fallthrough
CT: control target
= control target key end

     0   :  { %s1683_s18 = smov 0   ;;  %s2144_s0 = inlined_call_operand.vmem [shape: bf16[256,384], index: 0, kind: input, shape index: {}]   ;;  %s2145_s1 = inlined_call_operand.vmem [shape: bf16[384,256], index: 1, kind: input, shape index: {}]   ;;  %s2146_s2 = inlined_call_operand.vmem [shape: f32[1,256], index: 2, kind: input, shape index: {}]   ;;  %s2147_s3 = inlined_call_operand.vmem [shape: bf16[256,128], index: 3, kind: input, shape index: {}]   ;;  %s2148_s4 = inlined_call_operand.vmem [shape: f32[1,128], index: 4, kind: input, shape index: {}]   ;;  %s2149_s5 = inlined_call_operand.vmem [shape: f32[256,128], index: 5, kind: output, shape index: {}]  }
   0x1 LB: > { %s1270_s19 = sadd.s32 4294967295, %s1650_s18   ;;  %p1274_p0 = scmp.ge.s32.totalorder %s1650_s18, 1  ;;  %s1650_s18 = sphi %s1683_s18, %s15_s18  }
   0x2   : > { %p189_p1 = scmp.lt.s32.totalorder %s1650_s18, 3 }
   0x4   : > { %p190_p2 = pnand %p1274_p0, %p189_p1 }
   0x5   : > { %v1524_v0 = vld [vmem:[%s2145_s1 + $0x4] ss:$8 sps:$4 sm:$0xff] (!%p190_p2)   ;;  %v1526_v1 = vld [vmem:[%s2145_s1] ss:$8 sps:$4 sm:$0xff] (!%p190_p2)   ;;  %v1652_v2 = vmov (!%p190_p2), 0   ;;  %s1275_s9 = sshll.u32 (!%p190_p2), %s1270_s19, 4 }
   0x6   : > { %193 = sbr.rel (%p190_p2) target bundleno = 632 (0x278), region = 40  ;;  %857 = vmatprep.mubr.bf16.mxu1 (!%p190_p2), %v1652_v2  ;;  %692 = vmatprep.subr.bf16.mxu0 (!%p190_p2), %v1524_v0  ;;  %v1527_v3 = vld [vmem:[%s2145_s1 + $0x14] ss:$8 sps:$4 sm:$0xff] (!%p190_p2)   ;;  %v1529_v4 = vld [vmem:[%s2145_s1 + $0x10] ss:$8 sps:$4 sm:$0xff] (!%p190_p2)   ;;  %p219_p3 = scmp.lt.s32.totalorder (!%p190_p2), %s1275_s9, 31 }
   0x7   : > { %693 = vmatpush1.bf16.msra.mxu0 (!%p190_p2), %v1526_v1  ;;  %v1530_v5 = vld [vmem:[%s2145_s1 + $0x24] ss:$8 sps:$4 sm:$0xff] (!%p190_p2)   ;;  %v1532_v6 = vld [vmem:[%s2145_s1 + $0x20] ss:$8 sps:$4 sm:$0xff] (!%p190_p2)   ;;  %v1533_v7 = vld [vmem:[%s2145_s1 + $0x34] ss:$8 sps:$4 sm:$0xff] (!%p190_p2)  }
   0x8   : > { %694 = vmatprep.subr.bf16.mxu0 (!%p190_p2), %v1527_v3  ;;  %v1535_v8 = vld [vmem:[%s2145_s1 + $0x30] ss:$8 sps:$4 sm:$0xff] (!%p190_p2)   ;;  %v1536_v9 = vld [vmem:[%s2145_s1 + $0x44] ss:$8 sps:$4 sm:$0xff] (!%p190_p2)   ;;  %v1538_v10 = vld [vmem:[%s2145_s1 + $0x40] ss:$8 sps:$4 sm:$0xff] (!%p190_p2)  }
   0x9   : > { %v1539_v11 = vld [vmem:[%s2145_s1 + $0x54] ss:$8 sps:$4 sm:$0xff] (!%p190_p2)   ;;  %v1730_v12 = vld [vmem:[%s2145_s1 + $0x104] ss:$8 sps:$4 sm:$0xff] (!%p190_p2)   ;;  %v1735_v13 = vld [vmem:[%s2145_s1 + $0x100] ss:$8 sps:$4 sm:$0xff] (!%p190_p2)  }
   0xa   : > { %v1541_v14 = vld [vmem:[%s2145_s1 + $0x50] ss:$8 sps:$4 sm:$0xff] (!%p190_p2)   ;;  %v1542_v15 = vld [vmem:[%s2145_s1 + $0x64] ss:$8 sps:$4 sm:$0xff] (!%p190_p2)   ;;  %1434 = vmatprep.subr.bf16.mxu1 (!%p190_p2), %v1730_v12  ;;  %v1747_v16 = vld [vmem:[%s2145_s1 + $0x114] ss:$8 sps:$4 sm:$0xff] (!%p190_p2)  }
   0xb   : > { %695 = vmatpush1.bf16.msra.mxu0 (!%p190_p2), %v1529_v4  ;;  %1442 = vmatpush1.bf16.msra.mxu1 (!%p190_p2), %v1735_v13  ;;  %v1754_v17 = vld [vmem:[%s2145_s1 + $0x110] ss:$8 sps:$4 sm:$0xff] (!%p190_p2)   ;;  %v1544_v18 = vld [vmem:[%s2145_s1 + $0x60] ss:$8 sps:$4 sm:$0xff] (!%p190_p2)   ;;  %v1763_v19 = vld [vmem:[%s2145_s1 + $0x124] ss:$8 sps:$4 sm:$0xff] (!%p190_p2)  }
   0xc   : > { %696 = vmatprep.subr.bf16.mxu0 (!%p190_p2), %v1530_v5  ;;  %1435 = vmatprep.subr.bf16.mxu1 (!%p190_p2), %v1747_v16  ;;  %v1545_v20 = vld [vmem:[%s2145_s1 + $0x74] ss:$8 sps:$4 sm:$0xff] (!%p190_p2)   ;;  %v1777_v21 = vld [vmem:[%s2145_s1 + $0x120] ss:$8 sps:$4 sm:$0xff] (!%p190_p2)   ;;  %v1547_v23 = vld [vmem:[%s2145_s1 + $0x70] ss:$8 sps:$4 sm:$0xff] (!%p190_p2)  }
   0xd   : > { %s2151_s9 = smov (!%p219_p3, %s1275_s9), 31  ;;  %v1783_v22 = vld [vmem:[%s2145_s1 + $0x134] ss:$8 sps:$4 sm:$0xff]   ;;  %v1548_v25 = vld [vmem:[%s2145_s1 + $0x84] ss:$8 sps:$4 sm:$0xff]  }
   0xe   : > { %s1514_s29 = smul.u32 12, %s2151_s9  ;;  %v1796_v26 = vld [vmem:[%s2145_s1 + $0x130] ss:$8 sps:$4 sm:$0xff]   ;;  %v1802_v27 = vld [vmem:[%s2145_s1 + $0x144] ss:$8 sps:$4 sm:$0xff]   ;;  %s1278_s17 = sshll.u32 %s2151_s9, 3 }
   0xf   : > { %697 = vmatpush1.bf16.msra.mxu0 %v1532_v6  ;;  %1443 = vmatpush1.bf16.msra.mxu1 %v1754_v17  ;;  %v1550_v28 = vld [vmem:[%s2145_s1 + $0x80] ss:$8 sps:$4 sm:$0xff]   ;;  %v1551_v29 = vld [vmem:[%s2145_s1 + $0x94] ss:$8 sps:$4 sm:$0xff]   ;;  %v1553_v32 = vld [vmem:[%s2145_s1 + $0x90] ss:$8 sps:$4 sm:$0xff]   ;;  %s2107_s23 = scalar_lea.vmem %s2149_s5, %s1278_s17 }
  0x10   : > { %698 = vmatprep.subr.bf16.mxu0 %v1533_v7  ;;  %s1771_s16 = scalar_lea.vmem %s2144_s0, %s1514_s29  ;;  %1436 = vmatprep.subr.bf16.mxu1 %v1763_v19  ;;  %v1814_v30 = vld [vmem:[%s2145_s1 + $0x140] ss:$8 sps:$4 sm:$0xff]   ;;  %v1820_v31 = vld [vmem:[%s2145_s1 + $0x154] ss:$8 sps:$4 sm:$0xff]   ;;  %v1554_v33 = vld [vmem:[%s2145_s1 + $0xa4] ss:$8 sps:$4 sm:$0xff]  }
  0x11   : > { %v1585_v24 = vld [vmem:[%s1771_s16 + $0x4] ss:$12 sps:$4 sm:$0xff]   ;;  %v1556_v36 = vld [vmem:[%s2145_s1 + $0xa0] ss:$8 sps:$4 sm:$0xff]   ;;  %v1557_v37 = vld [vmem:[%s2145_s1 + $0xb4] ss:$8 sps:$4 sm:$0xff]  }
  0x12   : > { %724 = vmatprep.mubr.bf16.mxu0 %v1585_v24  ;;  %v1832_v34 = vld [vmem:[%s2145_s1 + $0x150] ss:$8 sps:$4 sm:$0xff]   ;;  %v1838_v35 = vld [vmem:[%s2145_s1 + $0x164] ss:$8 sps:$4 sm:$0xff]   ;;  %v1850_v38 = vld [vmem:[%s2145_s1 + $0x160] ss:$8 sps:$4 sm:$0xff]  }
  0x13   : > { %699 = vmatpush1.bf16.msra.mxu0 %v1535_v8  ;;  %1444 = vmatpush1.bf16.msra.mxu1 %v1777_v21  ;;  %v1856_v39 = vld [vmem:[%s2145_s1 + $0x174] ss:$8 sps:$4 sm:$0xff]   ;;  %v1559_v40 = vld [vmem:[%s2145_s1 + $0xb0] ss:$8 sps:$4 sm:$0xff]   ;;  %v1560_v41 = vld [vmem:[%s2145_s1 + $0xc4] ss:$8 sps:$4 sm:$0xff]  }
  0x14   : > { %700 = vmatprep.subr.bf16.mxu0 %v1536_v9  ;;  %1437 = vmatprep.subr.bf16.mxu1 %v1783_v22  ;;  %v1868_v42 = vld [vmem:[%s2145_s1 + $0x170] ss:$8 sps:$4 sm:$0xff]   ;;  %v1562_v43 = vld [vmem:[%s2145_s1 + $0xc0] ss:$8 sps:$4 sm:$0xff]   ;;  %v1566_v44 = vld [vmem:[%s2145_s1 + $0xd4] ss:$8 sps:$4 sm:$0xff]  }
  0x15   : > { %v1605_v45 = vld [vmem:[%s1771_s16 + $0x38] ss:$12 sps:$4 sm:$0xff]   ;;  %v1574_v48 = vld [vmem:[%s2145_s1 + $0xe0] ss:$8 sps:$4 sm:$0xff]   ;;  %v1578_v49 = vld [vmem:[%s2145_s1 + $0xf4] ss:$8 sps:$4 sm:$0xff]  }
  0x16   : > { %v1568_v46 = vld [vmem:[%s2145_s1 + $0xd0] ss:$8 sps:$4 sm:$0xff]   ;;  %v1572_v47 = vld [vmem:[%s2145_s1 + $0xe4] ss:$8 sps:$4 sm:$0xff]   ;;  %v1592_v53 = vld [vmem:[%s1771_s16 + $0x1c] ss:$12 sps:$4 sm:$0xff]  }
  0x17   : > { %701 = vmatpush1.bf16.msra.mxu0 %v1538_v10  ;;  %1445 = vmatpush1.bf16.msra.mxu1 %v1796_v26  ;;  %v1609_v50 = vld [vmem:[%s1771_s16 + $0x50] ss:$12 sps:$4 sm:$0xff]   ;;  %v1583_v52 = vld [vmem:[%s1771_s16] ss:$12 sps:$4 sm:$0xff]   ;;  %v1613_v54 = vld [vmem:[%s1771_s16 + $0x68] ss:$12 sps:$4 sm:$0xff]  }
  0x18   : > { %702 = vmatprep.subr.bf16.mxu0 %v1539_v11  ;;  %1438 = vmatprep.subr.bf16.mxu1 %v1802_v27  ;;  %v1580_v51 = vld [vmem:[%s2145_s1 + $0xf0] ss:$8 sps:$4 sm:$0xff]   ;;  %v1601_v56 = vld [vmem:[%s1771_s16 + $0x34] ss:$12 sps:$4 sm:$0xff]   ;;  %v1614_v1 = vld [vmem:[%s1771_s16 + $0x7c] ss:$12 sps:$4 sm:$0xff]  }
  0x19   : > { %v1595_v55 = vld [vmem:[%s1771_s16 + $0x18] ss:$12 sps:$4 sm:$0xff]   ;;  %v1617_v57 = vld [vmem:[%s1771_s16 + $0x80] ss:$12 sps:$4 sm:$0xff]   ;;  %v1604_v58 = vld [vmem:[%s1771_s16 + $0x30] ss:$12 sps:$4 sm:$0xff]  }
  0x1a   : > { %v1606_v59 = vld [vmem:[%s1771_s16 + $0x4c] ss:$12 sps:$4 sm:$0xff]   ;;  %v1608_v61 = vld [vmem:[%s1771_s16 + $0x48] ss:$12 sps:$4 sm:$0xff]   ;;  %v1610_v62 = vld [vmem:[%s1771_s16 + $0x64] ss:$12 sps:$4 sm:$0xff]  }
  0x1b   : > { %703 = vmatpush1.bf16.msra.mxu0 %v1541_v14  ;;  %1446 = vmatpush1.bf16.msra.mxu1 %v1814_v30  ;;  %v1621_v60 = vld [vmem:[%s1771_s16 + $0x98] ss:$12 sps:$4 sm:$0xff]   ;;  %v1625_v63 = vld [vmem:[%s1771_s16 + $0xb0] ss:$12 sps:$4 sm:$0xff]   ;;  %v1612_v0 = vld [vmem:[%s1771_s16 + $0x60] ss:$12 sps:$4 sm:$0xff]  }
  0x1c   : > { %704 = vmatprep.subr.bf16.mxu0 %v1542_v15  ;;  %1439 = vmatprep.subr.bf16.mxu1 %v1820_v31  ;;  %v1616_v3 = vld [vmem:[%s1771_s16 + $0x78] ss:$12 sps:$4 sm:$0xff]   ;;  %v1618_v4 = vld [vmem:[%s1771_s16 + $0x94] ss:$12 sps:$4 sm:$0xff]   ;;  %v1620_v5 = vld [vmem:[%s1771_s16 + $0x90] ss:$12 sps:$4 sm:$0xff]  }
  0x1d   : > { %v1622_v6 = vld [vmem:[%s1771_s16 + $0xac] ss:$12 sps:$4 sm:$0xff]   ;;  %v1624_v7 = vld [vmem:[%s1771_s16 + $0xa8] ss:$12 sps:$4 sm:$0xff]   ;;  %v1628_v10 = vld [vmem:[%s2147_s3 + $0x40] sm:$0xff]  }
  0x1e   : > { %v1626_v8 = vld [vmem:[%s1771_s16 + $0x8] ss:$12 sps:$4 sm:$0xff]   ;;  %v1627_v9 = vld [vmem:[%s1771_s16 + $0x20] ss:$12 sps:$4 sm:$0xff]   ;;  %v1634_v15 = vld [vmem:[%s2147_s3 + $0x58] sm:$0xff]  }
  0x1f   : > { %705 = vmatpush1.bf16.msra.mxu0 %v1544_v18  ;;  %1447 = vmatpush1.bf16.msra.mxu1 %v1832_v34  ;;  %v1629_v11 = vld [vmem:[%s2147_s3] sm:$0xff]   ;;  %v1633_v14 = vld [vmem:[%s2147_s3 + $0x10] sm:$0xff]   ;;  %v1643_v24 = vld [vmem:[%s2147_s3 + $0x38] sm:$0xff]  }
  0x20   : > { %706 = vmatprep.subr.bf16.mxu0 %v1545_v20  ;;  %1440 = vmatprep.subr.bf16.mxu1 %v1838_v35  ;;  %v1637_v18 = vld [vmem:[%s2147_s3 + $0x20] sm:$0xff]   ;;  %v1639_v20 = vld [vmem:[%s2147_s3 + $0x28] sm:$0xff]  }
  0x23   : > { %707 = vmatpush1.bf16.msra.mxu0 %v1547_v23  ;;  %1448 = vmatpush1.bf16.msra.mxu1 %v1850_v38  ;;  %v1642_v23 = vld [vmem:[%s2147_s3 + $0x78] sm:$0xff]  }
  0x24   : > { %708 = vmatprep.subr.bf16.mxu0 %v1548_v25  ;;  %1441 = vmatprep.subr.bf16.mxu1 %v1856_v39 }
  0x27   : > { %709 = vmatpush1.bf16.msra.mxu0 %v1550_v28  ;;  %1449 = vmatpush1.bf16.msra.mxu1 %v1868_v42 }
  0x28   : > { %710 = vmatprep.subr.bf16.mxu0 %v1551_v29  ;;  %1370 = vmatprep.subr.bf16.mxu1 %v1628_v10 }
  0x2a   : > { %858 = vmatmul.mubr.bf16.vlgmr.msra.gmra.mrb[0].mxu1 %v1605_v45 }
  0x2b   : > { %711 = vmatpush1.bf16.msra.mxu0 %v1553_v32  ;;  %867 = vmatprep.mubr.bf16.mxu1 %v1652_v2 }
  0x2c   : > { %712 = vmatprep.subr.bf16.mxu0 %v1554_v33  ;;  %1371 = vmatpush3.bf16.msra.mxu1 %v1629_v11  ;;  %v314_v33 = vlaneseq }
  0x2f   : > { %713 = vmatpush1.bf16.msra.mxu0 %v1556_v36 }
  0x30   : > { %714 = vmatprep.subr.bf16.mxu0 %v1557_v37  ;;  %v315_v37 = vshrl.u32 %v314_v33, 7 }
  0x32   : > { %868 = vmatmul.mubr.bf16.gmra.mrb[4].mxu1 %v1609_v50 }
  0x33   : > { %715 = vmatpush1.bf16.msra.mxu0 %v1559_v40  ;;  %877 = vmatprep.mubr.bf16.mxu1 %v1652_v2  ;;  %v312_v40 = vld [vmem:[%s2146_s2] sm:$0x3] }
  0x34   : > { %716 = vmatprep.subr.bf16.mxu0 %v1560_v41  ;;  %v320_v41 = vsub.s32 1, %v315_v37 }
  0x37   : > { %717 = vmatpush1.bf16.msra.mxu0 %v1562_v43 }
  0x38   : > { %718 = vmatprep.subr.bf16.mxu0 %v1566_v44 }
  0x3a   : > { %878 = vmatmul.mubr.bf16.gmra.mrb[8].mxu1 %v1613_v54 }
  0x3b   : > { %719 = vmatpush1.bf16.msra.mxu0 %v1568_v46  ;;  %887 = vmatprep.mubr.bf16.mxu1 %v1652_v2 }
  0x3c   : > { %720 = vmatprep.subr.bf16.mxu0 %v1572_v47  ;;  %v2008_v47 = vrot.slane %v312_v40, %v320_v41 }
  0x3f   : > { %721 = vmatpush1.bf16.msra.mxu0 %v1574_v48 }
  0x40   : > { %722 = vmatprep.subr.bf16.mxu0 %v1578_v49 }
  0x42   : > { %888 = vmatmul.mubr.bf16.gmra.mrb[12].mxu1 %v1617_v57 }
  0x43   : > { %723 = vmatpush1.bf16.msra.mxu0 %v1580_v51  ;;  %897 = vmatprep.mubr.bf16.mxu1 %v1652_v2 }
  0x44   : > { %805 = vmatprep.subr.bf16.mxu0 %v1730_v12  ;;  %v1630_v12 = vld [vmem:[%s2147_s3 + $0x48] sm:$0xff]  }
  0x45   : > { %1372 = vmatprep.subr.bf16.mxu1 %v1630_v12 }
  0x46   : > { %725 = vmatmul.mubr.bf16.vlgmr.msra.gmra.mrb[0].mxu0 %v1583_v52 }
  0x47   : > { %806 = vmatpush1.bf16.msra.mxu0 %v1735_v13  ;;  %734 = vmatprep.mubr.bf16.mxu0 %v1592_v53  ;;  %v1632_v13 = vld [vmem:[%s2147_s3 + $0x50] sm:$0xff]  }
  0x48   : > { %807 = vmatprep.subr.bf16.mxu0 %v1747_v16  ;;  %v1635_v16 = vld [vmem:[%s2147_s3 + $0x18] sm:$0xff]  }
  0x4a   : > { %898 = vmatmul.mubr.bf16.gmra.mrb[16].mxu1 %v1621_v60 }
  0x4b   : > { %808 = vmatpush1.bf16.msra.mxu0 %v1754_v17  ;;  %907 = vmatprep.mubr.bf16.mxu1 %v1652_v2  ;;  %v1636_v17 = vld [vmem:[%s2147_s3 + $0x60] sm:$0xff]  }
  0x4c   : > { %809 = vmatprep.subr.bf16.mxu0 %v1763_v19  ;;  %v1638_v19 = vld [vmem:[%s2147_s3 + $0x68] sm:$0xff]  }
  0x4e   : > { %735 = vmatmul.mubr.bf16.gmra.mrb[4].mxu0 %v1595_v55 }
  0x4f   : > { %744 = vmatprep.mubr.bf16.mxu0 %v1601_v56  ;;  %810 = vmatpush1.bf16.msra.mxu0 %v1777_v21  ;;  %v1640_v21 = vld [vmem:[%s2147_s3 + $0x70] sm:$0xff]  }
  0x50   : > { %811 = vmatprep.subr.bf16.mxu0 %v1783_v22  ;;  %v1641_v22 = vld [vmem:[%s2147_s3 + $0x30] sm:$0xff]  }
  0x52   : > { %908 = vmatmul.mubr.bf16.gmra.mrb[20].mxu1 %v1625_v63 }
  0x53   : > { %812 = vmatpush1.bf16.msra.mxu0 %v1796_v26 }
  0x54   : > { %813 = vmatprep.subr.bf16.mxu0 %v1802_v27 }
  0x56   : > { %745 = vmatmul.mubr.bf16.gmra.mrb[8].mxu0 %v1604_v58 }
  0x57   : > { %754 = vmatprep.mubr.bf16.mxu0 %v1606_v59  ;;  %814 = vmatpush1.bf16.msra.mxu0 %v1814_v30 }
  0x58   : > { %815 = vmatprep.subr.bf16.mxu0 %v1820_v31 }
  0x5b   : > { %816 = vmatpush1.bf16.msra.mxu0 %v1832_v34 }
  0x5c   : > { %817 = vmatprep.subr.bf16.mxu0 %v1838_v35 }
  0x5e   : > { %755 = vmatmul.mubr.bf16.gmra.mrb[12].mxu0 %v1608_v61 }
  0x5f   : > { %764 = vmatprep.mubr.bf16.mxu0 %v1610_v62  ;;  %818 = vmatpush1.bf16.msra.mxu0 %v1850_v38 }
  0x60   : > { %819 = vmatprep.subr.bf16.mxu0 %v1856_v39  ;;  %v316_v39 = vsub.s32 0, %v315_v37 }
  0x62   : > { %v2004_v45 = vrot.slane %v312_v40, %v316_v39 }
  0x63   : > { %820 = vmatpush1.bf16.msra.mxu0 %v1868_v42 }
  0x66   : > { %765 = vmatmul.mubr.bf16.gmra.mrb[16].mxu0 %v1612_v0 }
  0x67   : > { %774 = vmatprep.mubr.bf16.mxu0 %v1614_v1 }
  0x6e   : > { %775 = vmatmul.mubr.bf16.gmra.mrb[20].mxu0 %v1616_v3 }
  0x6f   : > { %784 = vmatprep.mubr.bf16.mxu0 %v1618_v4 }
  0x76   : > { %785 = vmatmul.mubr.bf16.gmra.mrb[24].mxu0 %v1620_v5 }
  0x77   : > { %794 = vmatprep.mubr.bf16.mxu0 %v1622_v6 }
  0x7e   : > { %795 = vmatmul.mubr.bf16.gmra.mrb[28].mxu0 %v1624_v7 }
  0x7f   : > { %837 = vmatprep.mubr.bf16.mxu0 %v1652_v2 }
  0x86   : > { %838 = vmatmul.mubr.bf16.vlgmr.msra.gmra.mrb[0].mxu0 %v1626_v8 }
  0x87   : > { %847 = vmatprep.mubr.bf16.mxu0 %v1652_v2  ;;  %v1631_v2 = vld [vmem:[%s2147_s3 + $0x8] sm:$0xff]  }
  0x88   : > { %1373 = vmatpush3.bf16.msra.mxu1 %v1631_v2 }
  0x89   : > { %1374 = vmatprep.subr.bf16.mxu1 %v1632_v13 }
  0x8c   : > { %1375 = vmatpush3.bf16.msra.mxu1 %v1633_v14 }
  0x8d   : > { %1376 = vmatprep.subr.bf16.mxu1 %v1634_v15 }
  0x8e   : > { %848 = vmatmul.mubr.bf16.gmra.mrb[4].mxu0 %v1627_v9 }
  0x90   : > { %1377 = vmatpush3.bf16.msra.mxu1 %v1635_v16 }
  0x91   : > { %1378 = vmatprep.subr.bf16.mxu1 %v1636_v17 }
  0x94   : > { %1379 = vmatpush3.bf16.msra.mxu1 %v1637_v18 }
  0x95   : > { %1380 = vmatprep.subr.bf16.mxu1 %v1638_v19 }
  0x98   : > { %1381 = vmatpush3.bf16.msra.mxu1 %v1639_v20 }
  0x99   : > { %1382 = vmatprep.subr.bf16.mxu1 %v1640_v21 }
  0x9c   : > { %1383 = vmatpush3.bf16.msra.mxu1 %v1641_v22 }
  0x9d   : > { %1384 = vmatprep.subr.bf16.mxu1 %v1642_v23 }
  0xa0   : > { %1385 = vmatpush3.bf16.msra.mxu1 %v1643_v24 }
  0xfd   : > { %v859_v25 = vpop.f32.mrb[0].mxu1 }
  0xfe   : > { %v861_v26 = vpop.f32.mrb[1].mxu1 }
  0xff   : > { %v863_v27 = vpop.f32.mrb[2].mxu1 }
 0x100   : > { %v865_v28 = vpop.f32.mrb[3].mxu1 }
 0x105   : > { %v869_v29 = vpop.f32.mrb[4].mxu1 }
 0x106   : > { %v871_v30 = vpop.f32.mrb[5].mxu1 }
 0x107   : > { %v873_v31 = vpop.f32.mrb[6].mxu1 }
 0x108   : > { %v875_v32 = vpop.f32.mrb[7].mxu1 }
 0x10d   : > { %v1987_v34 = vpop.f32.mrb[8].mxu1 }
 0x10e   : > { %v1989_v35 = vpop.f32.mrb[9].mxu1 }
 0x10f   : > { %v1991_v36 = vpop.f32.mrb[10].mxu1 }
 0x110   : > { %v1993_v38 = vpop.f32.mrb[11].mxu1 }
 0x115   : > { %v1998_v42 = vpop.f32.mrb[12].mxu1 }
 0x116   : > { %v2000_v43 = vpop.f32.mrb[13].mxu1 }
 0x117   : > { %v2002_v44 = vpop.f32.mrb[14].mxu1 }
 0x118   : > { %v2006_v46 = vpop.f32.mrb[15].mxu1 }
 0x11d   : > { %v2012_v53 = vpop.f32.mrb[16].mxu1 }
 0x11e   : > { %v2015_v57 = vpop.f32.mrb[17].mxu1 }
 0x11f   : > { %v2018_v60 = vpop.f32.mrb[18].mxu1 }
 0x120   : > { %v2020_v62 = vpop.f32.mrb[19].mxu1 }
 0x125   : > { %v2028_v12 = vpop.f32.mrb[20].mxu1 }
 0x126   : > { %v2031_v15 = vpop.f32.mrb[21].mxu1 }
 0x127   : > { %v2034_v18 = vpop.f32.mrb[22].mxu1 }
 0x128   : > { %v2036_v20 = vpop.f32.mrb[23].mxu1 }
 0x129   : > { %v746_v48 = vpop.f32.mrb[8].mxu0 }
 0x12a   : > { %v747_v49 = vadd.f32 %v746_v48, %v2004_v45  ;;  %v748_v50 = vpop.f32.mrb[9].mxu0 }
 0x12b   : > { %v749_v51 = vadd.f32 %v748_v50, %v2008_v47  ;;  %v750_v52 = vpop.f32.mrb[10].mxu0 }
 0x12c   : > { %v751_v54 = vadd.f32 %v750_v52, %v2004_v45  ;;  %v860_v55 = vadd.f32 %v859_v25, %v747_v49  ;;  %v752_v56 = vpop.f32.mrb[11].mxu0 }
 0x12d   : > { %v753_v58 = vadd.f32 %v752_v56, %v2008_v47  ;;  %v862_v59 = vadd.f32 %v861_v26, %v749_v51 }
 0x12e   : > { %v864_v61 = vadd.f32 %v863_v27, %v751_v54  ;;  %v926_v0 = vmax.f32 %v860_v55, 0.0 }
 0x12f   : > { %v866_v63 = vadd.f32 %v865_v28, %v753_v58  ;;  %v927_v3 = vmax.f32 %v862_v59, 0.0 }
 0x130   : > { %v928_v1 = vmax.f32 %v864_v61, 0.0 }
 0x131   : > { %v929_v4 = vmax.f32 %v866_v63, 0.0  ;;  %v756_v5 = vpop.f32.mrb[12].mxu0 }
 0x132   : > { %v2022_v6 = vpack.c.bf16 %v928_v1, %v926_v0  ;;  %v757_v7 = vadd.f32 %v756_v5, %v2004_v45  ;;  %v758_v8 = vpop.f32.mrb[13].mxu0 }
 0x133   : > { %v2025_v9 = vpack.c.bf16 %v929_v4, %v927_v3  ;;  %v759_v10 = vadd.f32 %v758_v8, %v2008_v47  ;;  %v760_v11 = vpop.f32.mrb[14].mxu0 }
 0x134   : > { %v761_v2 = vadd.f32 %v760_v11, %v2004_v45  ;;  %v870_v13 = vadd.f32 %v869_v29, %v757_v7  ;;  %v762_v14 = vpop.f32.mrb[15].mxu0 }
 0x135   : > { %v763_v16 = vadd.f32 %v762_v14, %v2008_v47  ;;  %v872_v17 = vadd.f32 %v871_v30, %v759_v10 }
 0x136   : > { %v874_v19 = vadd.f32 %v873_v31, %v761_v2  ;;  %v930_v22 = vmax.f32 %v870_v13, 0.0 }
 0x137   : > { %v876_v21 = vadd.f32 %v875_v32, %v763_v16  ;;  %v931_v24 = vmax.f32 %v872_v17, 0.0 }
 0x138   : > { %v932_v23 = vmax.f32 %v874_v19, 0.0 }
 0x139   : > { %v933_v25 = vmax.f32 %v876_v21, 0.0  ;;  %v766_v26 = vpop.f32.mrb[16].mxu0 }
 0x13a   : > { %v2038_v27 = vpack.c.bf16 %v932_v23, %v930_v22  ;;  %v767_v28 = vadd.f32 %v766_v26, %v2004_v45  ;;  %v768_v29 = vpop.f32.mrb[17].mxu0 }
 0x13b   : > { %v2041_v33 = vpack.c.bf16 %v933_v25, %v931_v24  ;;  %v769_v30 = vadd.f32 %v768_v29, %v2008_v47  ;;  %v770_v37 = vpop.f32.mrb[18].mxu0 }
 0x13c   : > { %v771_v31 = vadd.f32 %v770_v37, %v2004_v45  ;;  %v880_v39 = vadd.f32 %v1987_v34, %v767_v28  ;;  %v772_v32 = vpop.f32.mrb[19].mxu0 }
 0x13d   : > { %v773_v40 = vadd.f32 %v772_v32, %v2008_v47  ;;  %v882_v41 = vadd.f32 %v1989_v35, %v769_v30 }
 0x13e   : > { %v884_v48 = vadd.f32 %v1991_v36, %v771_v31  ;;  %v934_v50 = vmax.f32 %v880_v39, 0.0 }
 0x13f   : > { %v886_v49 = vadd.f32 %v1993_v38, %v773_v40  ;;  %v935_v52 = vmax.f32 %v882_v41, 0.0 }
 0x140   : > { %v936_v51 = vmax.f32 %v884_v48, 0.0 }
 0x141   : > { %v937_v54 = vmax.f32 %v886_v49, 0.0  ;;  %v776_v55 = vpop.f32.mrb[20].mxu0 }
 0x142   : > { %v2050_v56 = vpack.c.bf16 %v936_v51, %v934_v50  ;;  %v777_v58 = vadd.f32 %v776_v55, %v2004_v45  ;;  %v778_v59 = vpop.f32.mrb[21].mxu0 }
 0x143   : > { %v2053_v34 = vpack.c.bf16 %v937_v54, %v935_v52  ;;  %v779_v61 = vadd.f32 %v778_v59, %v2008_v47  ;;  %v780_v63 = vpop.f32.mrb[22].mxu0 }
 0x144   : > { %v781_v35 = vadd.f32 %v780_v63, %v2004_v45  ;;  %v890_v36 = vadd.f32 %v1998_v42, %v777_v58  ;;  %v782_v38 = vpop.f32.mrb[23].mxu0 }
 0x145   : > { %v783_v0 = vadd.f32 %v782_v38, %v2008_v47  ;;  %v892_v1 = vadd.f32 %v2000_v43, %v779_v61 }
 0x146   : > { %v894_v3 = vadd.f32 %v2002_v44, %v781_v35  ;;  %v938_v5 = vmax.f32 %v890_v36, 0.0 }
 0x147   : > { %v896_v4 = vadd.f32 %v2006_v46, %v783_v0  ;;  %v939_v8 = vmax.f32 %v892_v1, 0.0 }
 0x148   : > { %v940_v7 = vmax.f32 %v894_v3, 0.0 }
 0x149   : > { %v941_v10 = vmax.f32 %v896_v4, 0.0  ;;  %v786_v11 = vpop.f32.mrb[24].mxu0 }
 0x14a   : > { %v2062_v2 = vpack.c.bf16 %v940_v7, %v938_v5  ;;  %v787_v13 = vadd.f32 %v786_v11, %v2004_v45  ;;  %v788_v14 = vpop.f32.mrb[25].mxu0 }
 0x14b   : > { %v2065_v42 = vpack.c.bf16 %v941_v10, %v939_v8  ;;  %v789_v16 = vadd.f32 %v788_v14, %v2008_v47  ;;  %v790_v17 = vpop.f32.mrb[26].mxu0 }
 0x14c   : > { %v791_v43 = vadd.f32 %v790_v17, %v2004_v45  ;;  %v900_v44 = vadd.f32 %v2012_v53, %v787_v13  ;;  %v792_v46 = vpop.f32.mrb[27].mxu0 }
 0x14d   : > { %v793_v19 = vadd.f32 %v792_v46, %v2008_v47  ;;  %v902_v21 = vadd.f32 %v2015_v57, %v789_v16 }
 0x14e   : > { %v904_v22 = vadd.f32 %v2018_v60, %v791_v43  ;;  %v942_v24 = vmax.f32 %v900_v44, 0.0 }
 0x14f   : > { %v906_v23 = vadd.f32 %v2020_v62, %v793_v19  ;;  %v943_v26 = vmax.f32 %v902_v21, 0.0 }
 0x150   : > { %v944_v25 = vmax.f32 %v904_v22, 0.0 }
 0x151   : > { %v945_v28 = vmax.f32 %v906_v23, 0.0  ;;  %v796_v29 = vpop.f32.mrb[28].mxu0 }
 0x152   : > { %v962_v30 = vpack.c.bf16 %v944_v25, %v942_v24  ;;  %v797_v37 = vadd.f32 %v796_v29, %v2004_v45  ;;  %v798_v31 = vpop.f32.mrb[29].mxu0 }
 0x153   : > { %v963_v39 = vpack.c.bf16 %v945_v28, %v943_v26  ;;  %v799_v53 = vadd.f32 %v798_v31, %v2008_v47  ;;  %v800_v32 = vpop.f32.mrb[30].mxu0 }
 0x154   : > { %v801_v40 = vadd.f32 %v800_v32, %v2004_v45  ;;  %v910_v57 = vadd.f32 %v2028_v12, %v797_v37  ;;  %v802_v60 = vpop.f32.mrb[31].mxu0 }
 0x155   : > { %v803_v62 = vadd.f32 %v802_v60, %v2008_v47  ;;  %v912_v41 = vadd.f32 %v2031_v15, %v799_v53 }
 0x156   : > { %v914_v48 = vadd.f32 %v2034_v18, %v801_v40  ;;  %v946_v50 = vmax.f32 %v910_v57, 0.0 }
 0x157   : > { %v916_v49 = vadd.f32 %v2036_v20, %v803_v62  ;;  %v947_v52 = vmax.f32 %v912_v41, 0.0 }
 0x158   : > { %v948_v51 = vmax.f32 %v914_v48, 0.0 }
 0x159   : > { %v949_v54 = vmax.f32 %v916_v49, 0.0  ;;  %v839_v55 = vpop.f32.mrb[0].mxu0 }
 0x15a   : > { %v964_v58 = vpack.c.bf16 %v948_v51, %v946_v50  ;;  %v1450_v59 = vadd.f32 %v839_v55, %v2004_v45  ;;  %v841_v61 = vpop.f32.mrb[1].mxu0 }
 0x15b   : > { %v965_v63 = vpack.c.bf16 %v949_v54, %v947_v52  ;;  %v1451_v12 = vadd.f32 %v841_v61, %v2008_v47  ;;  %v843_v35 = vpop.f32.mrb[2].mxu0 }
 0x15c   : > { %v1452_v36 = vadd.f32 %v843_v35, %v2004_v45  ;;  %v845_v15 = vpop.f32.mrb[3].mxu0  ;;  %v918_v38 = vmax.f32 %v1450_v59, 0.0 }
 0x15d   : > { %v1453_v18 = vadd.f32 %v845_v15, %v2008_v47  ;;  %v919_v0 = vmax.f32 %v1451_v12, 0.0 }
 0x15e   : > { %v920_v20 = vmax.f32 %v1452_v36, 0.0 }
 0x15f   : > { %v921_v1 = vmax.f32 %v1453_v18, 0.0 }
 0x160   : > { %v950_v3 = vpack.c.bf16 %v920_v20, %v918_v38 }
 0x161   : > { %v951_v4 = vpack.c.bf16 %v921_v1, %v919_v0  ;;  %v849_v5 = vpop.f32.mrb[4].mxu0 }
 0x162   : > { %v1454_v7 = vadd.f32 %v849_v5, %v2004_v45  ;;  %v851_v8 = vpop.f32.mrb[5].mxu0 }
 0x163   : > { %v1455_v10 = vadd.f32 %v851_v8, %v2008_v47  ;;  %v853_v11 = vpop.f32.mrb[6].mxu0  ;;  %1133 = vmatprep.mubr.bf16.mxu1 %v951_v4 }
 0x164   : > { %v1456_v13 = vadd.f32 %v853_v11, %v2004_v45  ;;  %v855_v14 = vpop.f32.mrb[7].mxu0  ;;  %1134 = vmatmul.mubr.bf16.vlgmr.msra.gmra.mrb[24].mxu1 %v950_v3  ;;  %v922_v17 = vmax.f32 %v1454_v7, 0.0 }
 0x165   : > { %v1457_v16 = vadd.f32 %v855_v14, %v2008_v47  ;;  %v923_v44 = vmax.f32 %v1455_v10, 0.0  ;;  %v2102_v47 = vld [vmem:[%s2148_s4] ss:$0 sm:$0xff] }
 0x166   : > { %v924_v43 = vmax.f32 %v1456_v13, 0.0 }
 0x167   : > { %v925_v46 = vmax.f32 %v1457_v16, 0.0 }
 0x168   : > { %v952_v19 = vpack.c.bf16 %v924_v43, %v922_v17 }
 0x169   : > { %v953_v21 = vpack.c.bf16 %v925_v46, %v923_v44 }
 0x16b   : > { %1141 = vmatprep.mubr.bf16.mxu1 %v953_v21 }
 0x16c   : > { %1142 = vmatmul.mubr.bf16.gmra.mrb[28].mxu1 %v952_v19 }
 0x16d   : > { %1149 = vmatprep.mubr.bf16.mxu1 %v2025_v9 }
 0x174   : > { %1150 = vmatmul.mubr.bf16.gmra.mrb[32].mxu1 %v2022_v6 }
 0x175   : > { %1157 = vmatprep.mubr.bf16.mxu1 %v2041_v33 }
 0x17c   : > { %1158 = vmatmul.mubr.bf16.gmra.mrb[36].mxu1 %v2038_v27 }
 0x17d   : > { %1165 = vmatprep.mubr.bf16.mxu1 %v2053_v34 }
 0x184   : > { %1166 = vmatmul.mubr.bf16.gmra.mrb[40].mxu1 %v2050_v56 }
 0x185   : > { %1173 = vmatprep.mubr.bf16.mxu1 %v2065_v42 }
 0x18c   : > { %1174 = vmatmul.mubr.bf16.gmra.mrb[44].mxu1 %v2062_v2 }
 0x18d   : > { %1181 = vmatprep.mubr.bf16.mxu1 %v963_v39 }
 0x194   : > { %1182 = vmatmul.mubr.bf16.gmra.mrb[48].mxu1 %v962_v30 }
 0x195   : > { %1189 = vmatprep.mubr.bf16.mxu1 %v965_v63 }
 0x19c   : > { %1190 = vmatmul.mubr.bf16.gmra.mrb[52].mxu1 %v964_v58 }
 0x237   : > { %v1386_v45 = vpop.f32.mrb[24].mxu1 }
 0x238   : > { %v1387_v6 = vpop.f32.mrb[25].mxu1 }
 0x239   : > { %v1388_v9 = vadd.f32 %v1387_v6, %v1386_v45  ;;  %v1389_v27 = vpop.f32.mrb[26].mxu1 }
 0x23a   : > { %v1390_v33 = vpop.f32.mrb[27].mxu1 }
 0x23b   : > { %v1136_v56 = vadd.f32 %v1388_v9, %v2102_v47  ;;  %v1391_v34 = vadd.f32 %v1390_v33, %v1389_v27 }
 0x23d   : > { %1198 = vst [vmem:[%s2107_s23] sm:$0xff] %v1136_v56  ;;  %v1139_v2 = vadd.f32 %v1391_v34, %v2102_v47 }
 0x23f   : > { %1199 = vst [vmem:[%s2107_s23 + $0x8] sm:$0xff] %v1139_v2  ;;  %v1392_v42 = vpop.f32.mrb[28].mxu1 }
 0x240   : > { %v1393_v22 = vpop.f32.mrb[29].mxu1 }
 0x241   : > { %v1394_v23 = vadd.f32 %v1393_v22, %v1392_v42  ;;  %v1395_v24 = vpop.f32.mrb[30].mxu1 }
 0x242   : > { %v1396_v25 = vpop.f32.mrb[31].mxu1 }
 0x243   : > { %v1144_v26 = vadd.f32 %v1394_v23, %v2102_v47  ;;  %v1397_v28 = vadd.f32 %v1396_v25, %v1395_v24 }
 0x245   : > { %1200 = vst [vmem:[%s2107_s23 + $0x10] sm:$0xff] %v1144_v26  ;;  %v1147_v29 = vadd.f32 %v1397_v28, %v2102_v47 }
 0x247   : > { %1201 = vst [vmem:[%s2107_s23 + $0x18] sm:$0xff] %v1147_v29  ;;  %v1398_v30 = vpop.f32.mrb[32].mxu1 }
 0x248   : > { %v1399_v37 = vpop.f32.mrb[33].mxu1 }
 0x249   : > { %v1400_v31 = vadd.f32 %v1399_v37, %v1398_v30  ;;  %v1401_v39 = vpop.f32.mrb[34].mxu1 }
 0x24a   : > { %v1402_v53 = vpop.f32.mrb[35].mxu1 }
 0x24b   : > { %v1152_v32 = vadd.f32 %v1400_v31, %v2102_v47  ;;  %v1403_v40 = vadd.f32 %v1402_v53, %v1401_v39 }
 0x24d   : > { %1202 = vst [vmem:[%s2107_s23 + $0x20] sm:$0xff] %v1152_v32  ;;  %v1155_v57 = vadd.f32 %v1403_v40, %v2102_v47 }
 0x24f   : > { %1203 = vst [vmem:[%s2107_s23 + $0x28] sm:$0xff] %v1155_v57  ;;  %v1404_v60 = vpop.f32.mrb[36].mxu1 }
 0x250   : > { %v1405_v62 = vpop.f32.mrb[37].mxu1 }
 0x251   : > { %v1406_v41 = vadd.f32 %v1405_v62, %v1404_v60  ;;  %v1407_v48 = vpop.f32.mrb[38].mxu1 }
 0x252   : > { %v1408_v49 = vpop.f32.mrb[39].mxu1 }
 0x253   : > { %v1160_v50 = vadd.f32 %v1406_v41, %v2102_v47  ;;  %v1409_v51 = vadd.f32 %v1408_v49, %v1407_v48 }
 0x255   : > { %1204 = vst [vmem:[%s2107_s23 + $0x30] sm:$0xff] %v1160_v50  ;;  %v1163_v52 = vadd.f32 %v1409_v51, %v2102_v47 }
 0x257   : > { %1205 = vst [vmem:[%s2107_s23 + $0x38] sm:$0xff] %v1163_v52  ;;  %v1410_v54 = vpop.f32.mrb[40].mxu1 }
 0x258   : > { %v1411_v55 = vpop.f32.mrb[41].mxu1 }
 0x259   : > { %v1412_v58 = vadd.f32 %v1411_v55, %v1410_v54  ;;  %v1413_v59 = vpop.f32.mrb[42].mxu1 }
 0x25a   : > { %v1414_v61 = vpop.f32.mrb[43].mxu1 }
 0x25b   : > { %v1168_v63 = vadd.f32 %v1412_v58, %v2102_v47  ;;  %v1415_v12 = vadd.f32 %v1414_v61, %v1413_v59 }
 0x25d   : > { %1206 = vst [vmem:[%s2107_s23 + $0x40] sm:$0xff] %v1168_v63  ;;  %v1171_v35 = vadd.f32 %v1415_v12, %v2102_v47 }
 0x25f   : > { %1207 = vst [vmem:[%s2107_s23 + $0x48] sm:$0xff] %v1171_v35  ;;  %v1416_v36 = vpop.f32.mrb[44].mxu1 }
 0x260   : > { %v1417_v15 = vpop.f32.mrb[45].mxu1 }
 0x261   : > { %v1418_v18 = vadd.f32 %v1417_v15, %v1416_v36  ;;  %v1419_v38 = vpop.f32.mrb[46].mxu1 }
 0x262   : > { %v1420_v20 = vpop.f32.mrb[47].mxu1 }
 0x263   : > { %v1176_v0 = vadd.f32 %v1418_v18, %v2102_v47  ;;  %v1421_v1 = vadd.f32 %v1420_v20, %v1419_v38 }
 0x265   : > { %1208 = vst [vmem:[%s2107_s23 + $0x50] sm:$0xff] %v1176_v0  ;;  %v1179_v3 = vadd.f32 %v1421_v1, %v2102_v47 }
 0x267   : > { %1209 = vst [vmem:[%s2107_s23 + $0x58] sm:$0xff] %v1179_v3  ;;  %v1422_v4 = vpop.f32.mrb[48].mxu1 }
 0x268   : > { %v1423_v5 = vpop.f32.mrb[49].mxu1 }
 0x269   : > { %v1424_v7 = vadd.f32 %v1423_v5, %v1422_v4  ;;  %v1425_v8 = vpop.f32.mrb[50].mxu1 }
 0x26a   : > { %v1426_v10 = vpop.f32.mrb[51].mxu1 }
 0x26b   : > { %v1184_v11 = vadd.f32 %v1424_v7, %v2102_v47  ;;  %v1427_v13 = vadd.f32 %v1426_v10, %v1425_v8 }
 0x26d   : > { %1210 = vst [vmem:[%s2107_s23 + $0x60] sm:$0xff] %v1184_v11  ;;  %v1187_v14 = vadd.f32 %v1427_v13, %v2102_v47 }
 0x26f   : > { %1211 = vst [vmem:[%s2107_s23 + $0x68] sm:$0xff] %v1187_v14  ;;  %v1428_v16 = vpop.f32.mrb[52].mxu1 }
 0x270   : > { %v1429_v17 = vpop.f32.mrb[53].mxu1 }
 0x271   : > { %v1430_v43 = vadd.f32 %v1429_v17, %v1428_v16  ;;  %v1431_v44 = vpop.f32.mrb[54].mxu1 }
 0x272   : > { %v1432_v46 = vpop.f32.mrb[55].mxu1 }
 0x273   : > { %v1192_v19 = vadd.f32 %v1430_v43, %v2102_v47  ;;  %v1433_v21 = vadd.f32 %v1432_v46, %v1431_v44 }
 0x275   : > { %1212 = vst [vmem:[%s2107_s23 + $0x70] sm:$0xff] %v1192_v19  ;;  %v1195_v45 = vadd.f32 %v1433_v21, %v2102_v47 }
 0x277   : > { %1213 = vst [vmem:[%s2107_s23 + $0x78] sm:$0xff] %v1195_v45 }
 0x278 PF: > { %s15_s18 = sadd.s32 1, %s1650_s18  }
 0x279   : > { %p12_p4 = scmp.ge.s32.totalorder %s15_s18, 4  }
 0x27b   :  { %14 = sbr.rel (!%p12_p4) target bundleno = 1 (0x1), region = 70 }

</bundles_post_ra>
